<compile_context>
chip_gen: v5e
topology: v5e:2x2
jax: 0.10.0
libtpu: 0.0.40
codegen_flags: <defaults>
</compile_context>

<pallas_src>
import functools

import jax
import jax.numpy as jnp
from jax import lax
from jax.experimental import pallas as pl
from jax.experimental.pallas import tpu as pltpu

# ---------------- configuration (mirrors MLPLayer.__init__ args) ----------------
IN_DIMS = 32
OUT_DIMS = 64
USE_BN = True
NORM_TYPE = "batch"      # 'batch' or anything-else -> LayerNorm (matches the PyTorch code)
ACTIVATION = "relu"      # 'tanh' | 'relu' | 'none'
DROPOUT_PROB = 0.1
EPS = 1e-5

LANE = 128
MAX_ROW_TILE = 512


def _round_up(x, m):
    return ((x + m - 1) // m) * m


# ---------------- in-kernel helpers ----------------
def _apply_activation(y, activation):
    if activation == "tanh":
        return jnp.tanh(y)
    if activation == "relu":
        return jnp.maximum(y, 0.0)
    if activation == "none":
        return y
    raise ValueError("Invalid activation!")


def _mix32(h):
    """murmur3-style int32 finalizer (wrapping arithmetic, logical shifts)."""
    s16 = jnp.full(h.shape, 16, jnp.int32)
    s13 = jnp.full(h.shape, 13, jnp.int32)
    h = h ^ lax.shift_right_logical(h, s16)
    h = h * jnp.int32(-2048144789)          # 0x85EBCA6B
    h = h ^ lax.shift_right_logical(h, s13)
    h = h * jnp.int32(-1028477387)          # 0xC2B2AE35
    h = h ^ lax.shift_right_logical(h, s16)
    return h


def _apply_dropout(y, seed, dropout_prob, tm, dp):
    """Inverted-scaling dropout with a counter-based hash RNG (grid-invariant)."""
    if dropout_prob <= 0.0:
        return y
    if dropout_prob >= 1.0:
        return jnp.zeros_like(y)
    row = pl.program_id(0) * tm + lax.broadcasted_iota(jnp.int32, (tm, dp), 0)
    col = lax.broadcasted_iota(jnp.int32, (tm, dp), 1)
    idx = row * jnp.int32(dp) + col                       # global element counter
    h = _mix32(idx ^ (seed * jnp.int32(-1640531527)) ^ jnp.int32(843314857))
    bits31 = h & jnp.int32(0x7FFFFFFF)                    # uniform 31-bit integer
    thresh = jnp.int32(min(int(dropout_prob * 2147483648.0), 2147483647))
    keep = bits31 >= thresh                               # P(keep) = 1 - p (int domain)
    scale = jnp.float32(1.0 / (1.0 - dropout_prob))
    return jnp.where(keep, y * scale, 0.0)


# ---------------- kernels ----------------
def _matmul_stats_kernel(x_ref, w_ref, b_ref, y_ref, sum_ref, sq_ref,
                         *, tm, dp, n_valid):
    """Pass 1 (batch-norm path): y = x @ W + b, plus per-tile partial batch stats."""
    y = jnp.dot(x_ref[...], w_ref[...], preferred_element_type=jnp.float32)
    y = y + b_ref[...]
    y_ref[...] = y.astype(y_ref.dtype)
    # partial sums over the VALID rows only (N was padded up to a tile multiple)
    row = pl.program_id(0) * tm + lax.broadcasted_iota(jnp.int32, (tm, dp), 0)
    ym = jnp.where(row < n_valid, y, 0.0)
    sum_ref[...] = jnp.sum(ym, axis=0, keepdims=True).reshape(1, 1, dp)
    sq_ref[...] = jnp.sum(ym * ym, axis=0, keepdims=True).reshape(1, 1, dp)


def _batch_finish_kernel(seed_ref, y_ref, mean_ref, inv_ref, gamma_ref, beta_ref, o_ref,
                         *, tm, dp, activation, dropout_prob):
    """Pass 2 (batch-norm path): normalize + affine + activation + dropout."""
    y = y_ref[...].astype(jnp.float32)
    y = (y - mean_ref[...]) * inv_ref[...]
    y = y * gamma_ref[...] + beta_ref[...]
    y = _apply_activation(y, activation)
    y = _apply_dropout(y, seed_ref[0], dropout_prob, tm, dp)
    o_ref[...] = y.astype(o_ref.dtype)


def _fused_kernel(seed_ref, x_ref, w_ref, b_ref, gamma_ref, beta_ref, o_ref,
                  *, tm, dp, d_out, layer_norm, activation, dropout_prob, eps):
    """Fully fused path: LayerNorm (per-row stats) or no norm."""
    y = jnp.dot(x_ref[...], w_ref[...], preferred_element_type=jnp.float32)
    y = y + b_ref[...]
    if layer_norm:
        inv_d = jnp.float32(1.0 / d_out)
        if d_out != dp:
            # per-row stats over the REAL features only (exclude padded lanes)
            col = lax.broadcasted_iota(jnp.int32, (tm, dp), 1)
            cmask = col < d_out
            mean = jnp.sum(jnp.where(cmask, y, 0.0), axis=-1, keepdims=True) * inv_d
            diff = jnp.where(cmask, y - mean, 0.0)
        else:
            mean = jnp.sum(y, axis=-1, keepdims=True) * inv_d
            diff = y - mean
        var = jnp.sum(diff * diff, axis=-1, keepdims=True) * inv_d
        y = diff * lax.rsqrt(var + eps)
        y = y * gamma_ref[...] + beta_ref[...]        # padded gamma/beta are 0
    y = _apply_activation(y, activation)
    y = _apply_dropout(y, seed_ref[0], dropout_prob, tm, dp)
    o_ref[...] = y.astype(o_ref.dtype)


# ---------------- wrapper ----------------
def mlp_layer(x, w, b, gamma, beta, seed, *, use_bn=USE_BN, norm_type=NORM_TYPE,
              activation=ACTIVATION, dropout_prob=DROPOUT_PROB, eps=EPS,
              max_row_tile=MAX_ROW_TILE):
    """x: [..., D_in] -> [..., D_out]  (training-mode forward of MLPLayer)."""
    orig_shape = x.shape
    d_in = orig_shape[-1]
    d_out = w.shape[0]
    x2 = x.reshape(-1, d_in)                              # [N, D_in]
    n = x2.shape[0]

    dp = _round_up(d_out, LANE)                           # lane-dense feature dim
    tm = min(max_row_tile, _round_up(n, 8))               # sublane-aligned row tile
    n_pad = _round_up(n, tm)
    nt = n_pad // tm

    if n_pad != n:
        x2 = jnp.pad(x2, ((0, n_pad - n), (0, 0)))
    # weight presented as [D_in, D_out_pad]; transpose is fused into the pad copy.
    w_p = (jnp.pad(w, ((0, dp - d_out), (0, 0))) if dp != d_out else w).T

    def _pad_vec(v):
        v = v.astype(jnp.float32)
        v = jnp.pad(v, (0, dp - d_out)) if dp != d_out else v
        return v.reshape(1, dp)

    b_p, g_p, bt_p = _pad_vec(b), _pad_vec(gamma), _pad_vec(beta)
    seed_arr = jnp.asarray(seed, jnp.int32).reshape(1)
    out_dtype = x.dtype

    # scoped VMEM request derived from the (double-buffered) block sizes, with headroom;
    # clamped so it is safe on v7x's 64 MiB physical VMEM as well.
    blk_bytes = 4 * (tm * d_in + d_in * dp + 2 * tm * dp + 8 * dp)
    vmem_limit = int(min(max(6 * blk_bytes, 16 * 1024 * 1024), 32 * 1024 * 1024))
    cparams = pltpu.CompilerParams(dimension_semantics=("parallel",),
                                   vmem_limit_bytes=vmem_limit)

    if use_bn and norm_type == "batch":
        # ---- pass 1: matmul + bias + per-tile partial sum / sum-of-squares ----
        y_pad, psum, psq = pl.pallas_call(
            functools.partial(_matmul_stats_kernel, tm=tm, dp=dp, n_valid=n),
            out_shape=(jax.ShapeDtypeStruct((n_pad, dp), jnp.float32),
                       jax.ShapeDtypeStruct((nt, 1, dp), jnp.float32),
                       jax.ShapeDtypeStruct((nt, 1, dp), jnp.float32)),
            grid_spec=pltpu.PrefetchScalarGridSpec(
                num_scalar_prefetch=0,
                grid=(nt,),
                in_specs=[pl.BlockSpec((tm, d_in), lambda i: (i, 0)),
                          pl.BlockSpec((d_in, dp), lambda i: (0, 0)),
                          pl.BlockSpec((1, dp), lambda i: (0, 0))],
                out_specs=(pl.BlockSpec((tm, dp), lambda i: (i, 0)),
                           pl.BlockSpec((1, 1, dp), lambda i: (i, 0, 0)),
                           pl.BlockSpec((1, 1, dp), lambda i: (i, 0, 0)))),
            compiler_params=cparams,
        )(x2, w_p, b_p)

        # tiny cross-tile reduction: biased batch stats (torch training-mode BatchNorm1d)
        s = jnp.sum(psum[:, 0, :], axis=0)
        sq = jnp.sum(psq[:, 0, :], axis=0)
        mean = s / n
        var = jnp.maximum(sq / n - mean * mean, 0.0)
        inv = lax.rsqrt(var + eps)
        mean2 = mean.reshape(1, dp)
        inv2 = inv.reshape(1, dp)

        # ---- pass 2: normalize + affine + activation + dropout ----
        out_pad = pl.pallas_call(
            functools.partial(_batch_finish_kernel, tm=tm, dp=dp,
                              activation=activation, dropout_prob=dropout_prob),
            out_shape=jax.ShapeDtypeStruct((n_pad, dp), out_dtype),
            grid_spec=pltpu.PrefetchScalarGridSpec(
                num_scalar_prefetch=1,                     # dropout seed in SMEM
                grid=(nt,),
                in_specs=[pl.BlockSpec((tm, dp), lambda i, s_: (i, 0)),
                          pl.BlockSpec((1, dp), lambda i, s_: (0, 0)),
                          pl.BlockSpec((1, dp), lambda i, s_: (0, 0)),
                          pl.BlockSpec((1, dp), lambda i, s_: (0, 0)),
                          pl.BlockSpec((1, dp), lambda i, s_: (0, 0))],
                out_specs=pl.BlockSpec((tm, dp), lambda i, s_: (i, 0))),
            compiler_params=cparams,
        )(seed_arr, y_pad, mean2, inv2, g_p, bt_p)
    else:
        layer_norm = bool(use_bn)                          # use_bn + non-'batch' -> LayerNorm
        out_pad = pl.pallas_call(
            functools.partial(_fused_kernel, tm=tm, dp=dp, d_out=d_out,
                              layer_norm=layer_norm, activation=activation,
                              dropout_prob=dropout_prob, eps=eps),
            out_shape=jax.ShapeDtypeStruct((n_pad, dp), out_dtype),
            grid_spec=pltpu.PrefetchScalarGridSpec(
                num_scalar_prefetch=1,
                grid=(nt,),
                in_specs=[pl.BlockSpec((tm, d_in), lambda i, s_: (i, 0)),
                          pl.BlockSpec((d_in, dp), lambda i, s_: (0, 0)),
                          pl.BlockSpec((1, dp), lambda i, s_: (0, 0)),
                          pl.BlockSpec((1, dp), lambda i, s_: (0, 0)),
                          pl.BlockSpec((1, dp), lambda i, s_: (0, 0))],
                out_specs=pl.BlockSpec((tm, dp), lambda i, s_: (i, 0))),
            compiler_params=cparams,
        )(seed_arr, x2, w_p, b_p, g_p, bt_p)

    out = out_pad[:n, :d_out]                              # drop row + lane padding
    return out.reshape(*orig_shape[:-1], d_out)


# ---------------- init + pure-JAX reference (pre-dropout) ----------------
def init_params(key, in_dims, out_dims):
    """Deterministic init mirroring nn.Linear / norm-layer defaults."""
    k_w, k_b = jax.random.split(key)
    bound = 1.0 / (in_dims ** 0.5)
    w = jax.random.uniform(k_w, (out_dims, in_dims), jnp.float32, -bound, bound)
    b = jax.random.uniform(k_b, (out_dims,), jnp.float32, -bound, bound)
    gamma = jnp.ones((out_dims,), jnp.float32)
    beta = jnp.zeros((out_dims,), jnp.float32)
    return w, b, gamma, beta


def mlp_reference_pre_dropout(x, w, b, gamma, beta, *, use_bn, norm_type, activation, eps=EPS):
    y = jnp.einsum("...i,oi->...o", x, w) + b
    if use_bn:
        shp = y.shape
        y2 = y.reshape(-1, shp[-1])
        if norm_type == "batch":
            mean = y2.mean(axis=0)
            var = ((y2 - mean) ** 2).mean(axis=0)
            y2 = (y2 - mean) / jnp.sqrt(var + eps)
        else:
            mean = y2.mean(axis=-1, keepdims=True)
            var = ((y2 - mean) ** 2).mean(axis=-1, keepdims=True)
            y2 = (y2 - mean) / jnp.sqrt(var + eps)
        y = (y2 * gamma + beta).reshape(shp)
    if activation == "tanh":
        y = jnp.tanh(y)
    elif activation == "relu":
        y = jnp.maximum(y, 0.0)
    return y


if __name__ == "__main__":
    key = jax.random.PRNGKey(0)
    k_x, k_p = jax.random.split(key)

    # [***, D_in] input: batch=2, seq=8, in_dims=32  -> output [2, 8, 64]
    x = jax.random.normal(k_x, (2, 8, IN_DIMS), jnp.float32)
    w, b, gamma, beta = init_params(k_p, IN_DIMS, OUT_DIMS)
    seed = jnp.array([0], dtype=jnp.int32)

    def check(y, use_bn, norm_type, activation, p):
        ref = mlp_reference_pre_dropout(x, w, b, gamma, beta, use_bn=use_bn,
                                        norm_type=norm_type, activation=activation)
        scale = 1.0 / (1.0 - p)
        # every element must be either dropped (0) or ref * 1/(1-p)
        err = jnp.minimum(jnp.abs(y - ref * scale), jnp.abs(y))
        assert float(jnp.max(err / (1.0 + jnp.abs(ref)))) < 1e-2
        assert bool(jnp.all(jnp.isfinite(y)))

    # configured path: Linear -> BatchNorm1d -> ReLU -> Dropout
    y = mlp_layer(x, w, b, gamma, beta, seed, use_bn=USE_BN, norm_type=NORM_TYPE,
                  activation=ACTIVATION, dropout_prob=DROPOUT_PROB)
    y = jax.block_until_ready(y)
    assert y.shape == (2, 8, OUT_DIMS), y.shape
    assert y.dtype == x.dtype
    check(y, USE_BN, NORM_TYPE, ACTIVATION, DROPOUT_PROB)

    # also exercise the fused LayerNorm + tanh path
    y2 = mlp_layer(x, w, b, gamma, beta, seed, use_bn=True, norm_type="layer",
                   activation="tanh", dropout_prob=DROPOUT_PROB)
    y2 = jax.block_until_ready(y2)
    assert y2.shape == (2, 8, OUT_DIMS)
    check(y2, True, "layer", "tanh", DROPOUT_PROB)

    print("KERNEL_OK")
</pallas_src>

<mosaic_0001>
module attributes {stable_mosaic.version = 11 : i64} {
  func.func @_matmul_stats_kernel(%arg0: i32, %arg1: memref<16x32xf32, #tpu.memory_space<vmem>>, %arg2: memref<32x128xf32, #tpu.memory_space<vmem>>, %arg3: memref<1x128xf32, #tpu.memory_space<vmem>>, %arg4: memref<16x128xf32, #tpu.memory_space<vmem>>, %arg5: memref<1x1x128xf32, #tpu.memory_space<vmem>>, %arg6: memref<1x1x128xf32, #tpu.memory_space<vmem>>) attributes {dimension_semantics = [#tpu.dimension_semantics<parallel>], iteration_bounds = array<i64: 1>, scalar_prefetch = 0 : i64, scratch_operands = 0 : i64, tpu.core_type = #tpu.core_type<tc>, window_params = [{transform_indices = @transform_0, window_bounds = array<i64: 16, 32>}, {pipeline_mode = #tpu.pipeline_mode<synchronous>, transform_indices = @transform_1, window_bounds = array<i64: 32, 128>}, {pipeline_mode = #tpu.pipeline_mode<synchronous>, transform_indices = @transform_2, window_bounds = array<i64: 1, 128>}, {transform_indices = @transform_3, window_bounds = array<i64: 16, 128>}, {transform_indices = @transform_4, window_bounds = array<i64: 1, 1, 128>}, {transform_indices = @transform_5, window_bounds = array<i64: 1, 1, 128>}]} {
    %c0 = arith.constant 0 : index
    %c0_0 = arith.constant 0 : index
    %0 = vector.load %arg1[%c0, %c0_0] : memref<16x32xf32, #tpu.memory_space<vmem>>, vector<16x32xf32>
    %c0_1 = arith.constant 0 : index
    %c0_2 = arith.constant 0 : index
    %1 = vector.load %arg2[%c0_1, %c0_2] : memref<32x128xf32, #tpu.memory_space<vmem>>, vector<32x128xf32>
    %cst = arith.constant dense<0.000000e+00> : vector<16x128xf32>
    %2 = tpu.matmul %0, %1, %cst {dimension_numbers = #tpu.dot_dimension_numbers<[1], [0], [0], [1], [0, 0, 1, 1], [], []>} : vector<16x32xf32>, vector<32x128xf32>, vector<16x128xf32> -> vector<16x128xf32>
    %c0_3 = arith.constant 0 : index
    %c0_4 = arith.constant 0 : index
    %3 = vector.load %arg3[%c0_3, %c0_4] : memref<1x128xf32, #tpu.memory_space<vmem>>, vector<1x128xf32>
    %4 = vector.broadcast %3 : vector<1x128xf32> to vector<16x128xf32>
    %5 = arith.addf %2, %4 : vector<16x128xf32>
    %c0_5 = arith.constant 0 : index
    %c0_6 = arith.constant 0 : index
    %6 = vector.load %arg4[%c0_5, %c0_6] : memref<16x128xf32, #tpu.memory_space<vmem>>, vector<16x128xf32>
    tpu.vector_store %arg4[%c0_5, %c0_6], %5 {strides = array<i32>} : memref<16x128xf32, #tpu.memory_space<vmem>>, vector<16x128xf32>,
    %c16_i32 = arith.constant 16 : i32
    %7 = arith.muli %arg0, %c16_i32 : i32
    %8 = tpu.iota {dimensions = array<i32: 0>} : vector<16x128xi32>
    %9 = vector.broadcast %7 : i32 to vector<16x128xi32>
    %10 = arith.addi %9, %8 : vector<16x128xi32>
    %c16_i32_7 = arith.constant 16 : i32
    %11 = vector.broadcast %c16_i32_7 : i32 to vector<16x128xi32>
    %12 = arith.cmpi slt, %10, %11 : vector<16x128xi32>
    %cst_8 = arith.constant 0.000000e+00 : f32
    %13 = vector.broadcast %cst_8 : f32 to vector<16x128xf32>
    %14 = arith.select %12, %5, %13 : vector<16x128xi1>, vector<16x128xf32>
    %cst_9 = arith.constant dense<0.000000e+00> : vector<128xf32>
    %15 = vector.multi_reduction <add>, %14, %cst_9 [0] : vector<16x128xf32> to vector<128xf32>
    %16 = vector.shape_cast %15 : vector<128xf32> to vector<1x128xf32>
    %17 = vector.shape_cast %16 : vector<1x128xf32> to vector<1x1x128xf32>
    %c0_10 = arith.constant 0 : index
    %c0_11 = arith.constant 0 : index
    %c0_12 = arith.constant 0 : index
    %18 = vector.load %arg5[%c0_10, %c0_11, %c0_12] : memref<1x1x128xf32, #tpu.memory_space<vmem>>, vector<1x1x128xf32>
    tpu.vector_store %arg5[%c0_10, %c0_11, %c0_12], %17 {strides = array<i32>} : memref<1x1x128xf32, #tpu.memory_space<vmem>>, vector<1x1x128xf32>,
    %19 = arith.mulf %14, %14 : vector<16x128xf32>
    %cst_13 = arith.constant dense<0.000000e+00> : vector<128xf32>
    %20 = vector.multi_reduction <add>, %19, %cst_13 [0] : vector<16x128xf32> to vector<128xf32>
    %21 = vector.shape_cast %20 : vector<128xf32> to vector<1x128xf32>
    %22 = vector.shape_cast %21 : vector<1x128xf32> to vector<1x1x128xf32>
    %c0_14 = arith.constant 0 : index
    %c0_15 = arith.constant 0 : index
    %c0_16 = arith.constant 0 : index
    %23 = vector.load %arg6[%c0_14, %c0_15, %c0_16] : memref<1x1x128xf32, #tpu.memory_space<vmem>>, vector<1x1x128xf32>
    tpu.vector_store %arg6[%c0_14, %c0_15, %c0_16], %22 {strides = array<i32>} : memref<1x1x128xf32, #tpu.memory_space<vmem>>, vector<1x1x128xf32>,
    return
  }
  func.func @transform_0(%arg0: i32) -> (i32, i32) {
    %c0_i32 = arith.constant 0 : i32
    %c0_i32_0 = arith.constant 0 : i32
    return %arg0, %c0_i32 : i32, i32
  }
  func.func @transform_1(%arg0: i32) -> (i32, i32) {
    %c0_i32 = arith.constant 0 : i32
    %c0_i32_0 = arith.constant 0 : i32
    %c0_i32_1 = arith.constant 0 : i32
    return %c0_i32, %c0_i32_0 : i32, i32
  }
  func.func @transform_2(%arg0: i32) -> (i32, i32) {
    %c0_i32 = arith.constant 0 : i32
    %c0_i32_0 = arith.constant 0 : i32
    %c0_i32_1 = arith.constant 0 : i32
    return %c0_i32, %c0_i32_0 : i32, i32
  }
  func.func @transform_3(%arg0: i32) -> (i32, i32) {
    %c0_i32 = arith.constant 0 : i32
    %c0_i32_0 = arith.constant 0 : i32
    return %arg0, %c0_i32 : i32, i32
  }
  func.func @transform_4(%arg0: i32) -> (i32, i32, i32) {
    %c0_i32 = arith.constant 0 : i32
    %c0_i32_0 = arith.constant 0 : i32
    %c0_i32_1 = arith.constant 0 : i32
    return %arg0, %c0_i32, %c0_i32_0 : i32, i32, i32
  }
  func.func @transform_5(%arg0: i32) -> (i32, i32, i32) {
    %c0_i32 = arith.constant 0 : i32
    %c0_i32_0 = arith.constant 0 : i32
    %c0_i32_1 = arith.constant 0 : i32
    return %arg0, %c0_i32, %c0_i32_0 : i32, i32, i32
  }
}

</mosaic_0001>

<bundles_post_ra>
// kernel: tpu_custom_call.1
= control target key start
LH: loop header
LB: loop body
LE: loop exit
PB: predicated region body
PF: predicated region fallthrough
CT: control target
= control target key end

     0   :  { %11 = vsyncpa [#allocation3], 0  ;;  %s379_s0 = inlined_call_operand.hbm [shape: f32[16,32], index: 0, kind: input, shape index: {}]   ;;  %s380_s1 = inlined_call_operand.hbm [shape: f32[32,128], index: 1, kind: input, shape index: {}]   ;;  %s381_s2 = inlined_call_operand.vmem [shape: f32[1,128], index: 2, kind: input, shape index: {}]   ;;  %s382_s3 = inlined_call_operand.hbm [shape: f32[16,128], index: 3, kind: output, shape index: {0}]   ;;  %s383_s4 = inlined_call_operand.hbm [shape: f32[1,1,128], index: 4, kind: output, shape index: {1}]   ;;  %s384_s5 = inlined_call_operand.hbm [shape: f32[1,1,128], index: 5, kind: output, shape index: {2}]  }
   0x1   :  { %12 = vsyncpa [#allocation6], 0 }
   0x2   :  { %13 = vsyncpa [#allocation4], 0 }
   0x3   :  { %14 = vsyncpa [#allocation9], 0  ;;  %s19_s20 = sshll.u32 %s379_s0, 4  ;;  %s315_s21 = smov [#allocation2]   ;;  %s20_s20 = int_to_ptr.hbm [resolvable:$true] %s19_s20 }
   0x4   :  { %s21_s22 = sshll.u32 %s315_s21, 4  ;;  %s32_s25 = sshll.u32 %s380_s1, 4  ;;  %s22_s22 = int_to_ptr.vmem [resolvable:$true] %s21_s22  ;;  %s33_s25 = int_to_ptr.hbm [resolvable:$true] %s32_s25 }
   0x5   :  { %s316_s26 = smov 128   ;;  %s317_s27 = smov 8  }
   0x6   :  { %27 = dma.hbm_to_vmem [thread:$0]  %s20_s20, 256, %s22_s22, [#allocation3], %s316_s26, %s316_s26, %s317_s27  }
   0x7   :  { %s318_s28 = smov [#allocation5]  }
   0x8   :  { %s34_s29 = sshll.u32 %s318_s28, 4  ;;  %s35_s29 = int_to_ptr.vmem [resolvable:$true] %s34_s29 }
   0x9   :  { %40 = dma.hbm_to_vmem [thread:$0]  %s33_s25, 512, %s35_s29, [#allocation6], %s316_s26, %s316_s26, %s317_s27  }
   0xa   :  { %307 = dma.done.wait [#allocation3], 256  }
   0xb   :  { %308 = vsyncadd [#allocation3], 4294967040 }
   0xc   :  { %309 = dma.done.wait [#allocation6], 512  }
   0xd   :  { %310 = vsyncadd [#allocation6], 4294966784  ;;  %v56_v0 = vld [vmem:[#allocation5 + $0x18] sm:$0xff]  ;;  %v55_v1 = vld [vmem:[#allocation5 + $0x10] sm:$0xff]  ;;  %vm61_vm0 = vcmask 261120   ;;  %s319_s30 = smov [#allocation7]  }
   0xe   :  { %80 = vmatpush.msra.mxu0 %v56_v0  ;;  %175 = vmatpush.msra.mxu1 %v56_v0  ;;  %v54_v2 = vld [vmem:[#allocation5 + $0x8] sm:$0xff]  ;;  %v53_v3 = vld [vmem:[#allocation5] sm:$0xff]  ;;  %v51_v4 = vld [vmem:[#allocation2] sm:$0xff]  ;;  %s126_s6 = sshll.u32 %s319_s30, 4  ;;  %s128_s9 = sshll.u32 %s382_s3, 4  ;;  %s127_s6 = int_to_ptr.vmem [resolvable:$true] %s126_s6  ;;  %s129_s9 = int_to_ptr.hbm [resolvable:$true] %s128_s9 }
   0xf   :  { %v52_v5 = vld [vmem:[#allocation2 + $0x8] sm:$0xff]  ;;  %v186_v6 = vld [vmem:[%s381_s2] ss:$0 sm:$0xff]  ;;  %s320_s2 = smov [#allocation8]   ;;  %s142_s12 = sshll.u32 %s383_s4, 4  ;;  %s143_s12 = int_to_ptr.hbm [resolvable:$true] %s142_s12 }
  0x10   :  { %81 = vmatpush.msra.mxu0 %v55_v1  ;;  %176 = vmatpush.msra.mxu1 %v55_v1  ;;  %s140_s3 = sshll.u32 %s320_s2, 4  ;;  %s321_s13 = smov [#allocation10]   ;;  %s141_s3 = int_to_ptr.vmem [resolvable:$true] %s140_s3 }
  0x11   :  { %s151_s14 = sshll.u32 %s321_s13, 4  ;;  %s153_s17 = sshll.u32 %s384_s5, 4  ;;  %s152_s14 = int_to_ptr.vmem [resolvable:$true] %s151_s14  ;;  %s154_s17 = int_to_ptr.hbm [resolvable:$true] %s153_s17 }
  0x12   :  { %82 = vmatpush.msra.mxu0 %v54_v2  ;;  %177 = vmatpush.msra.mxu1 %v54_v2 }
  0x14   :  { %83 = vmatpush.msra.mxu0 %v53_v3  ;;  %178 = vmatpush.msra.mxu1 %v53_v3 }
  0x15   :  { %173 = vmatmul.msk.f32.vlgmr.msra.gmra.mxu0 %vm61_vm0, %v51_v4  ;;  %174 = vmatmul.msk.f32.vlgmr.msra.gmra.mxu1 %vm61_vm0, %v52_v5 }
  0x92   :  { %v85_v7 = vpop.f32.mrf.mxu0  ;;  %v88_v8 = vpop.f32.mrf.mxu1 }
  0x93   :  { %v86_v9 = vadd.f32 %v186_v6, %v85_v7  ;;  %v89_v10 = vadd.f32 %v186_v6, %v88_v8 }
  0x95   :  { %91 = vst [vmem:[#allocation7] sm:$0xff] %v86_v9  ;;  %v112_v11 = vmul.f32 %v86_v9, %v86_v9  ;;  %v104_v12 = vadd.f32 %v89_v10, %v86_v9  ;;  %v113_v13 = vmul.f32 %v89_v10, %v89_v10 }
  0x96   :  { %92 = vst [vmem:[#allocation7 + $0x8] sm:$0xff] %v89_v10 }
  0x97   :  { %v105_v14 = vrot.slane %v104_v12, 4  ;;  %v114_v15 = vadd.f32 %v113_v13, %v112_v11  ;;  %134 = dma.vmem_to_hbm [thread:$0]  %s127_s6, 256, %s129_s9, [#allocation4], %s316_s26, %s316_s26, %s317_s27  }
  0x99   :  { %v106_v16 = vadd.f32 %v105_v14, %v104_v12  ;;  %v115_v17 = vrot.slane %v114_v15, 4 }
  0x9b   :  { %v107_v18 = vrot.slane %v106_v16, 2  ;;  %v116_v19 = vadd.f32 %v115_v17, %v114_v15 }
  0x9d   :  { %v117_v20 = vrot.slane %v116_v19, 2  ;;  %v108_v21 = vadd.f32 %v107_v18, %v106_v16 }
  0x9f   :  { %v109_v22 = vrot.slane %v108_v21, 1  ;;  %v118_v23 = vadd.f32 %v117_v20, %v116_v19 }
  0xa1   :  { %v110_v24 = vadd.f32 %v109_v22, %v108_v21  ;;  %v119_v25 = vrot.slane %v118_v23, 1 }
  0xa3   :  { %111 = vst [vmem:[#allocation8] sm:$0x1] %v110_v24  ;;  %v120_v26 = vadd.f32 %v119_v25, %v118_v23 }
  0xa4   :  { %145 = dma.vmem_to_hbm [thread:$0]  %s141_s3, 16, %s143_s12, [#allocation9]  }
  0xa5   :  { %121 = vst [vmem:[#allocation10] sm:$0x1] %v120_v26 }
  0xa6   :  { %156 = dma.vmem_to_hbm [thread:$0]  %s152_s14, 16, %s154_s17, [#allocation9]  }
  0xa7   :  { %311 = dma.done.wait [#allocation4], 256  }
  0xa8   :  { %312 = vsyncadd [#allocation4], 4294967040 }
  0xa9   :  { %313 = dma.done.wait [#allocation9], 32  }
  0xaa   :  { %314 = vsyncadd [#allocation9], 4294967264 }
  0xab   :  { %169 = vsyncpa [#allocation3], 1 }
  0xac   :  { %170 = vsyncpa [#allocation6], 1 }
  0xad   :  { %171 = vsyncpa [#allocation4], 1 }
  0xae   :  { %172 = vsyncpa [#allocation9], 1 }

</bundles_post_ra>
